<compile_context>
chip_gen: v6e
topology: v6e:2x2x1
jax: 0.10.0
libtpu: 0.0.40
codegen_flags: <defaults>
</compile_context>

<pallas_src>
import jax
import jax.numpy as jnp
from jax.experimental import pallas as pl
from jax.experimental.pallas import tpu as pltpu


def _round_up(x, m):
    return (x + m - 1) // m * m


# ----------------------------- router kernel -------------------------------

def _router_kernel(x_ref, w_ref, b_ref, o_ref):
    o_ref[...] = (
        jnp.dot(x_ref[...], w_ref[...], preferred_element_type=jnp.float32)
        + b_ref[...]
    )


def router_logits_pallas(x2d_pad, w_router, b_router, tm):
    """x2d_pad: (T_pad, H) f32.  Returns (T_pad, E) f32 logits."""
    t_pad, h = x2d_pad.shape
    e = w_router.shape[1]
    e_pad = _round_up(e, 128)                       # lane-dense output width
    w_p = jnp.zeros((h, e_pad), jnp.float32).at[:, :e].set(w_router)
    b_p = jnp.zeros((1, e_pad), jnp.float32).at[:, :e].set(b_router)
    num_tiles = t_pad // tm
    out = pl.pallas_call(
        _router_kernel,
        out_shape=jax.ShapeDtypeStruct((t_pad, e_pad), jnp.float32),
        grid=(num_tiles,),
        in_specs=[
            pl.BlockSpec((tm, h), lambda t: (t, 0)),
            pl.BlockSpec((h, e_pad), lambda t: (0, 0)),
            pl.BlockSpec((1, e_pad), lambda t: (0, 0)),
        ],
        out_specs=pl.BlockSpec((tm, e_pad), lambda t: (t, 0)),
        compiler_params=pltpu.CompilerParams(
            dimension_semantics=("parallel",)),
    )(x2d_pad, w_p, b_p)
    return out[:, :e]


# ----------------------------- expert kernel -------------------------------

def _moe_kernel(sched_ref, counts_ref, x_ref, g_ref,
                w1_ref, b1_ref, w3_ref, b3_ref, w2_ref, b2_ref,
                o_ref, acc_ref):
    t = pl.program_id(0)
    j = pl.program_id(1)
    i = pl.program_id(2)
    nj = pl.num_programs(1)
    ni = pl.num_programs(2)

    @pl.when(jnp.logical_and(j == 0, i == 0))
    def _():
        acc_ref[...] = jnp.zeros_like(acc_ref)

    # Only run the FFN for expert slots that some token in this tile selected
    # (shared experts + active routed experts).  Padded slots are skipped.
    @pl.when(j < counts_ref[t])
    def _():
        x = x_ref[...]                                            # (TM,H) bf16
        h1 = jnp.dot(x, w1_ref[...],
                     preferred_element_type=jnp.float32) + b1_ref[...]
        h3 = jnp.dot(x, w3_ref[...],
                     preferred_element_type=jnp.float32) + b3_ref[...]
        h = (h1 * jax.nn.sigmoid(h1)) * h3                        # f32 SwiGLU
        y = jnp.dot(h.astype(jnp.bfloat16), w2_ref[...],
                    preferred_element_type=jnp.float32)           # (TM,H) f32
        # Add the expert output bias exactly once (on the last I tile).
        y = y + (i == ni - 1).astype(jnp.float32) * b2_ref[...]
        acc_ref[...] += g_ref[...] * y                            # (TM,1)*(TM,H)

    @pl.when(jnp.logical_and(j == nj - 1, i == ni - 1))
    def _():
        o_ref[...] = acc_ref[...].astype(o_ref.dtype)


def moe_experts_pallas(sched, counts, x2d_pad, gate_wts,
                       w1, b1, w3, b3, w2, b2, *, tm, ti_target=512):
    """sched: (num_tiles, L) int32 expert ids; counts: (num_tiles,) int32.
    gate_wts: (NE, T_pad, 1) f32 per-expert per-token combine weight."""
    t_pad, h = x2d_pad.shape
    ne, _, inter = w1.shape
    num_tiles = t_pad // tm
    nslots = sched.shape[1]

    # Intermediate-dim tiling (keeps weight tiles bounded in VMEM on v7x).
    if inter <= ti_target:
        ti, i_pad = inter, inter
    else:
        ti = ti_target
        i_pad = _round_up(inter, ti)
    ni = i_pad // ti
    if i_pad != inter:
        padi = i_pad - inter
        w1 = jnp.pad(w1, ((0, 0), (0, 0), (0, padi)))
        b1 = jnp.pad(b1, ((0, 0), (0, 0), (0, padi)))
        w3 = jnp.pad(w3, ((0, 0), (0, 0), (0, padi)))
        b3 = jnp.pad(b3, ((0, 0), (0, 0), (0, padi)))
        w2 = jnp.pad(w2, ((0, 0), (0, padi), (0, 0)))

    # bf16 matmul operands (f32 MXU accumulation in-kernel); biases stay f32.
    x_bf16 = x2d_pad.astype(jnp.bfloat16)
    w1 = w1.astype(jnp.bfloat16)
    w3 = w3.astype(jnp.bfloat16)
    w2 = w2.astype(jnp.bfloat16)
    b1 = b1.astype(jnp.float32)
    b3 = b3.astype(jnp.float32)
    b2 = b2.astype(jnp.float32)

    grid = (num_tiles, nslots, ni)

    # Rough VMEM budget: double-buffered bf16 weight tiles + resident x / gate /
    # accumulator / output tiles, plus headroom; capped at v7x physical 64 MiB.
    weight_tile_bytes = (2 * h * ti + ti * h) * 2 + (2 * ti + h) * 4
    need = (2 * weight_tile_bytes + 2 * tm * h * 2 + 2 * tm * 128 * 4
            + 2 * tm * h * 4 + tm * h * 4 + (4 << 20))
    vmem_limit = int(min(64 << 20, max(need, 16 << 20)))

    cost = pl.CostEstimate(
        flops=int(6 * t_pad * h * i_pad * nslots),
        transcendentals=int(t_pad * i_pad * nslots),
        bytes_accessed=int(num_tiles * nslots * ni * weight_tile_bytes
                           + t_pad * h * (2 + 4)),
    )

    return pl.pallas_call(
        _moe_kernel,
        out_shape=jax.ShapeDtypeStruct((t_pad, h), jnp.float32),
        grid_spec=pltpu.PrefetchScalarGridSpec(
            num_scalar_prefetch=2,
            grid=grid,
            in_specs=[
                pl.BlockSpec((tm, h), lambda t, j, i, s, c: (t, 0)),      # x
                pl.BlockSpec((None, tm, 1),
                             lambda t, j, i, s, c: (s[t, j], t, 0)),      # gate
                pl.BlockSpec((None, h, ti),
                             lambda t, j, i, s, c: (s[t, j], 0, i)),      # w1
                pl.BlockSpec((None, 1, ti),
                             lambda t, j, i, s, c: (s[t, j], 0, i)),      # b1
                pl.BlockSpec((None, h, ti),
                             lambda t, j, i, s, c: (s[t, j], 0, i)),      # w3
                pl.BlockSpec((None, 1, ti),
                             lambda t, j, i, s, c: (s[t, j], 0, i)),      # b3
                pl.BlockSpec((None, ti, h),
                             lambda t, j, i, s, c: (s[t, j], i, 0)),      # w2
                pl.BlockSpec((None, 1, h),
                             lambda t, j, i, s, c: (s[t, j], 0, 0)),      # b2
            ],
            out_specs=pl.BlockSpec((tm, h), lambda t, j, i, s, c: (t, 0)),
            scratch_shapes=[pltpu.VMEM((tm, h), jnp.float32)],
        ),
        compiler_params=pltpu.CompilerParams(
            dimension_semantics=("parallel", "arbitrary", "arbitrary"),
            vmem_limit_bytes=vmem_limit),
        cost_estimate=cost,
    )(sched, counts, x_bf16, gate_wts, w1, b1, w3, b3, w2, b2)


# --------------------------- routing / schedule glue -------------------------

def _expert_schedule(indices, num_routed, num_shared, top_k, t, t_pad, tm):
    """Per-token-tile compacted expert schedule + valid-slot counts."""
    num_tiles = t_pad // tm
    onehot = jax.nn.one_hot(indices, num_routed, dtype=jnp.float32)   # (T,K,E)
    tok_sel = onehot.max(axis=1) > 0                                  # (T,E)
    tok_sel_pad = jnp.zeros((t_pad, num_routed), bool).at[:t].set(tok_sel)
    active = tok_sel_pad.reshape(num_tiles, tm, num_routed).any(axis=1)
    num_active = jnp.sum(active, axis=-1).astype(jnp.int32)           # (tiles,)
    l_routed = int(min(num_routed, tm * top_k))
    order = jnp.argsort((~active).astype(jnp.int32), axis=-1,
                        stable=True).astype(jnp.int32)                # active first
    routed_sched = order[:, :l_routed]
    last_valid = jnp.take_along_axis(
        order, jnp.maximum(num_active - 1, 0)[:, None], axis=-1)      # (tiles,1)
    pos = jnp.arange(l_routed, dtype=jnp.int32)[None, :]
    # Padded slots repeat the last active expert id so their weight blocks
    # dedup with the previous grid step (no re-DMA); compute is skipped.
    routed_sched = jnp.where(pos < num_active[:, None], routed_sched, last_valid)
    shared_sched = jnp.broadcast_to(
        jnp.arange(num_shared, dtype=jnp.int32)[None, :],
        (num_tiles, num_shared))
    sched = jnp.concatenate([shared_sched, num_shared + routed_sched],
                            axis=-1).astype(jnp.int32)
    counts = (num_shared + num_active).astype(jnp.int32)
    return sched, counts, onehot


def quasar_moe_forward(x, params, *, top_k, num_shared, num_routed,
                       alpha=0.01, gamma=0.01):
    """Returns (output, new_expert_biases, sequence_balance_loss)."""
    B, S, H = x.shape
    T = B * S
    NE = num_shared + num_routed

    tm = min(256, _round_up(T, 16))            # token tile (bf16-friendly)
    t_pad = _round_up(T, tm)

    x2d = x.reshape(T, H).astype(jnp.float32)
    x2d_pad = jnp.zeros((t_pad, H), jnp.float32).at[:T].set(x2d)

    # Router (Pallas, f32, lane-padded E, token-tiled) + routing glue in JAX.
    router_logits = router_logits_pallas(
        x2d_pad, params["w_router"], params["b_router"], tm)[:T]      # (T,E)
    logits_with_bias = router_logits + params["expert_biases"][None, :]
    _, indices = jax.lax.top_k(logits_with_bias, top_k)               # (T,K)
    original_scores = jnp.take_along_axis(router_logits, indices, axis=-1)
    scores = jax.nn.sigmoid(original_scores)
    gates = scores / jnp.maximum(
        jnp.sum(jnp.abs(scores), axis=-1, keepdims=True), 1e-12)      # L1 norm

    sched, counts, onehot = _expert_schedule(
        indices, num_routed, num_shared, top_k, T, t_pad, tm)

    # Per-(token, expert) combine weights; shared experts weighted 1/num_shared.
    routed_w = jnp.einsum("tk,tke->te", gates, onehot)                # (T,E)
    shared_w = jnp.full((T, num_shared), 1.0 / max(num_shared, 1), jnp.float32)
    combine = jnp.concatenate([shared_w, routed_w], axis=-1)          # (T,NE)
    combine_pad = jnp.zeros((t_pad, NE), jnp.float32).at[:T].set(combine)
    gate_wts = jnp.transpose(combine_pad)[:, :, None]                 # (NE,T_pad,1)

    out2d = moe_experts_pallas(sched, counts, x2d_pad, gate_wts,
                               params["w1"], params["b1"],
                               params["w3"], params["b3"],
                               params["w2"], params["b2"], tm=tm)
    output = out2d[:T].reshape(B, S, H)

    # Load-balancing side effects (bias update + aux loss) do not affect the
    # forward output; computed functionally in plain JAX glue.
    # TODO(synk): in-place Parameter update / module attribute assignment has no
    # Pallas equivalent; returned as extra values instead.
    counts_e = jnp.sum(jax.nn.one_hot(indices.reshape(-1), num_routed,
                                      dtype=jnp.float32), axis=0)
    target_count = T * top_k / num_routed
    new_biases = params["expert_biases"] - gamma * (counts_e - target_count)
    seq_counts = jnp.sum(jax.nn.one_hot(indices.reshape(B, -1), num_routed,
                                        dtype=jnp.float32), axis=1)
    seq_frac = seq_counts / (S * top_k)
    seq_loss = alpha * jnp.mean((seq_frac - 1.0 / num_routed) ** 2)
    return output, new_biases, seq_loss


# ------------------------- pure-JAX faithful reference ---------------------

def _ffn_ref(x, w1, b1, w3, b3, w2, b2):
    h1 = x @ w1 + b1[0]
    h3 = x @ w3 + b3[0]
    return (jax.nn.silu(h1) * h3) @ w2 + b2[0]


def reference_forward(x, p, *, top_k, num_shared, num_routed):
    B, S, H = x.shape
    logits = x @ p["w_router"] + p["b_router"][0]
    logits_b = logits + p["expert_biases"]
    _, indices = jax.lax.top_k(logits_b, top_k)
    original = jnp.take_along_axis(logits, indices, axis=-1)
    scores = jax.nn.sigmoid(original)
    gates = scores / jnp.sum(scores, axis=-1, keepdims=True)

    shared = jnp.zeros_like(x)
    for i in range(num_shared):
        shared = shared + _ffn_ref(x, p["w1"][i], p["b1"][i], p["w3"][i],
                                   p["b3"][i], p["w2"][i], p["b2"][i])
    shared = shared / num_shared

    routed = jnp.zeros_like(x)
    flat_x = x.reshape(-1, H)
    for k in range(top_k):
        eidx = indices[..., k].reshape(-1)
        gate = gates[..., k].reshape(-1, 1)
        for i in range(num_routed):
            j = num_shared + i                     # routed expert slot in stack
            mask = (eidx == i).astype(x.dtype)[:, None]
            eo = _ffn_ref(flat_x * mask, p["w1"][j], p["b1"][j], p["w3"][j],
                          p["b3"][j], p["w2"][j], p["b2"][j])
            routed = routed + (eo * (gate * mask)).reshape(x.shape)
    return shared + routed


# ---------------------------------- main ------------------------------------

def init_params(key, H, I, num_shared, num_routed):
    NE = num_shared + num_routed
    ks = jax.random.split(key, 8)
    s = 0.05
    return {
        "w1": jax.random.normal(ks[0], (NE, H, I), jnp.float32) * s,
        "b1": jax.random.normal(ks[1], (NE, 1, I), jnp.float32) * s,
        "w3": jax.random.normal(ks[2], (NE, H, I), jnp.float32) * s,
        "b3": jax.random.normal(ks[3], (NE, 1, I), jnp.float32) * s,
        "w2": jax.random.normal(ks[4], (NE, I, H), jnp.float32) * s,
        "b2": jax.random.normal(ks[5], (NE, 1, H), jnp.float32) * s,
        "w_router": jax.random.normal(ks[6], (H, num_routed), jnp.float32) * s,
        "b_router": jax.random.normal(ks[7], (1, num_routed), jnp.float32) * s,
        "expert_biases": jnp.zeros((num_routed,), jnp.float32),
    }


if __name__ == "__main__":
    B, S, H, I = 2, 8, 32, 64
    NUM_SHARED, NUM_ROUTED, TOP_K = 1, 8, 4

    key = jax.random.PRNGKey(0)
    kx, kp = jax.random.split(key)
    x = jax.random.normal(kx, (B, S, H), jnp.float32)
    params = init_params(kp, H, I, NUM_SHARED, NUM_ROUTED)

    out, new_biases, seq_loss = quasar_moe_forward(
        x, params, top_k=TOP_K, num_shared=NUM_SHARED, num_routed=NUM_ROUTED)
    out = jax.block_until_ready(out)
    jax.block_until_ready(new_biases)
    jax.block_until_ready(seq_loss)

    ref = reference_forward(x, params, top_k=TOP_K, num_shared=NUM_SHARED,
                            num_routed=NUM_ROUTED)
    assert out.shape == (B, S, H)
    # bf16 matmul operands in the expert kernel -> looser tolerance vs f32 ref.
    assert jnp.allclose(out, ref, atol=1e-2, rtol=1e-2), (
        float(jnp.max(jnp.abs(out - ref))))
    print("KERNEL_OK")
</pallas_src>

<mosaic_0001>
module attributes {stable_mosaic.version = 11 : i64} {
  func.func @_router_kernel(%arg0: i32, %arg1: memref<16x32xf32, #tpu.memory_space<vmem>>, %arg2: memref<32x128xf32, #tpu.memory_space<vmem>>, %arg3: memref<1x128xf32, #tpu.memory_space<vmem>>, %arg4: memref<16x128xf32, #tpu.memory_space<vmem>>) attributes {dimension_semantics = [#tpu.dimension_semantics<parallel>], iteration_bounds = array<i64: 1>, scalar_prefetch = 0 : i64, scratch_operands = 0 : i64, tpu.core_type = #tpu.core_type<tc>, window_params = [{transform_indices = @transform_0, window_bounds = array<i64: 16, 32>}, {pipeline_mode = #tpu.pipeline_mode<synchronous>, transform_indices = @transform_1, window_bounds = array<i64: 32, 128>}, {pipeline_mode = #tpu.pipeline_mode<synchronous>, transform_indices = @transform_2, window_bounds = array<i64: 1, 128>}, {transform_indices = @transform_3, window_bounds = array<i64: 16, 128>}]} {
    %c0 = arith.constant 0 : index
    %c0_0 = arith.constant 0 : index
    %0 = vector.load %arg1[%c0, %c0_0] : memref<16x32xf32, #tpu.memory_space<vmem>>, vector<16x32xf32>
    %c0_1 = arith.constant 0 : index
    %c0_2 = arith.constant 0 : index
    %1 = vector.load %arg2[%c0_1, %c0_2] : memref<32x128xf32, #tpu.memory_space<vmem>>, vector<32x128xf32>
    %cst = arith.constant dense<0.000000e+00> : vector<16x128xf32>
    %2 = tpu.matmul %0, %1, %cst {dimension_numbers = #tpu.dot_dimension_numbers<[1], [0], [0], [1], [0, 0, 1, 1], [], []>} : vector<16x32xf32>, vector<32x128xf32>, vector<16x128xf32> -> vector<16x128xf32>
    %c0_3 = arith.constant 0 : index
    %c0_4 = arith.constant 0 : index
    %3 = vector.load %arg3[%c0_3, %c0_4] : memref<1x128xf32, #tpu.memory_space<vmem>>, vector<1x128xf32>
    %4 = vector.broadcast %3 : vector<1x128xf32> to vector<16x128xf32>
    %5 = arith.addf %2, %4 : vector<16x128xf32>
    %c0_5 = arith.constant 0 : index
    %c0_6 = arith.constant 0 : index
    %6 = vector.load %arg4[%c0_5, %c0_6] : memref<16x128xf32, #tpu.memory_space<vmem>>, vector<16x128xf32>
    tpu.vector_store %arg4[%c0_5, %c0_6], %5 {strides = array<i32>} : memref<16x128xf32, #tpu.memory_space<vmem>>, vector<16x128xf32>,
    return
  }
  func.func @transform_0(%arg0: i32) -> (i32, i32) {
    %c0_i32 = arith.constant 0 : i32
    %c0_i32_0 = arith.constant 0 : i32
    return %arg0, %c0_i32 : i32, i32
  }
  func.func @transform_1(%arg0: i32) -> (i32, i32) {
    %c0_i32 = arith.constant 0 : i32
    %c0_i32_0 = arith.constant 0 : i32
    %c0_i32_1 = arith.constant 0 : i32
    return %c0_i32, %c0_i32_0 : i32, i32
  }
  func.func @transform_2(%arg0: i32) -> (i32, i32) {
    %c0_i32 = arith.constant 0 : i32
    %c0_i32_0 = arith.constant 0 : i32
    %c0_i32_1 = arith.constant 0 : i32
    return %c0_i32, %c0_i32_0 : i32, i32
  }
  func.func @transform_3(%arg0: i32) -> (i32, i32) {
    %c0_i32 = arith.constant 0 : i32
    %c0_i32_0 = arith.constant 0 : i32
    return %arg0, %c0_i32 : i32, i32
  }
}

</mosaic_0001>

<bundles_post_ra>
// kernel: tpu_custom_call.1
= control target key start
LH: loop header
LB: loop body
LE: loop exit
PB: predicated region body
PF: predicated region fallthrough
CT: control target
= control target key end

     0   :  { %8 = vsyncpa [#allocation3], 0  ;;  %s297_s0 = inlined_call_operand.hbm [shape: f32[16,32], index: 0, kind: input, shape index: {}]   ;;  %s298_s1 = inlined_call_operand.hbm [shape: f32[32,128], index: 1, kind: input, shape index: {}]   ;;  %s299_s2 = inlined_call_operand.vmem [shape: f32[1,128], index: 2, kind: input, shape index: {}]   ;;  %s300_s3 = inlined_call_operand.hbm [shape: f32[16,128], index: 3, kind: output, shape index: {}]  }
   0x1   :  { %9 = vsyncpa [#allocation6], 0 }
   0x2   :  { %10 = vsyncpa [#allocation4], 0  ;;  %s249_s12 = smov [#allocation2]  }
   0x3   :  { %s16_s13 = sshll.u32 %s249_s12, 4  ;;  %s17_s13 = int_to_ptr.vmem [resolvable:$true] %s16_s13 }
   0x4   :  { %s191_s14 = scalar_lea.vmem %s17_s13, 256  ;;  %p196_p1 = scmp.lt.s32.totalorder %s17_s13, %s17_s13 }
   0x5   :  { %p192_p0 = scmp.ne.s32.totalorder %s17_s13, %s191_s14  ;;  %p197_p2 = scmp.lt.s32.totalorder %s191_s14, %s191_s14 }
   0x7   :  { %p198_p3 = por %p197_p2, %p196_p1 }
   0x9   :  { %p199_p4 = pnand %p198_p3, %p192_p0 }
   0xb   :  { %202 = shalt.err (!%p199_p4)
}
   0xc   :  { %s250_s15 = smov 128   ;;  %s251_s16 = smov 8  }
   0xd   :  { %22 = dma.hbm_to_vmem [thread:$0]  %s297_s0, 256, %s17_s13, [#allocation3], %s250_s15, %s250_s15, %s251_s16  }
   0xe   :  { %s252_s19 = smov [#allocation5]  }
   0xf   :  { %s28_s20 = sshll.u32 %s252_s19, 4  ;;  %s29_s20 = int_to_ptr.vmem [resolvable:$true] %s28_s20 }
  0x10   :  { %s211_s21 = scalar_lea.vmem %s29_s20, 512  ;;  %p216_p6 = scmp.lt.s32.totalorder %s29_s20, %s29_s20 }
  0x11   :  { %p212_p5 = scmp.ne.s32.totalorder %s29_s20, %s211_s21  ;;  %p217_p7 = scmp.lt.s32.totalorder %s211_s21, %s211_s21 }
  0x13   :  { %p218_p8 = por %p217_p7, %p216_p6 }
  0x15   :  { %p219_p9 = pnand %p218_p8, %p212_p5 }
  0x17   :  { %222 = shalt.err (!%p219_p9)
}
  0x18   :  { %34 = dma.hbm_to_vmem [thread:$0]  %s298_s1, 512, %s29_s20, [#allocation6], %s250_s15, %s250_s15, %s251_s16  }
  0x19   :  { %243 = dma.done.wait [#allocation3], 256  }
  0x1a   :  { %244 = vsyncadd [#allocation3], 4294967040 }
  0x1b   :  { %245 = dma.done.wait [#allocation6], 512  }
  0x1c   :  { %246 = vsyncadd [#allocation6], 4294966784  ;;  %vm56_vm0 = vcmask 261120   ;;  %v48_v0 = vld [vmem:[#allocation5 + $0x18] sm:$0xff]  ;;  %v47_v1 = vld [vmem:[#allocation5 + $0x10] sm:$0xff]  ;;  %s253_s24 = smov [#allocation7]  }
  0x1d   :  { %167 = vmatprep.subr.mxu0 %v48_v0  ;;  %v43_v2 = vld [vmem:[#allocation2] sm:$0xff]  ;;  %v46_v3 = vld [vmem:[#allocation5 + $0x8] sm:$0xff]  ;;  %v45_v4 = vld [vmem:[#allocation5] sm:$0xff]  ;;  %s145_s25 = sshll.u32 %s253_s24, 4  ;;  %s146_s25 = int_to_ptr.vmem [resolvable:$true] %s145_s25 }
  0x1e   :  { %168 = vmatpush3.msra.mxu0 %v48_v0  ;;  %175 = vmatprep.mubr.msk.f32.mxu0 %vm56_vm0, %v43_v2  ;;  %v44_v5 = vld [vmem:[#allocation2 + $0x8] sm:$0xff]  ;;  %v158_v6 = vld [vmem:[%s299_s2] ss:$0 sm:$0xff]  ;;  %s223_s26 = scalar_lea.vmem %s146_s25, 256  ;;  %p228_p11 = scmp.lt.s32.totalorder %s146_s25, %s146_s25 }
  0x1f   :  { %169 = vmatprep.subr.mxu0 %v47_v1  ;;  %p224_p10 = scmp.ne.s32.totalorder %s146_s25, %s223_s26  ;;  %p229_p12 = scmp.lt.s32.totalorder %s223_s26, %s223_s26 }
  0x20   :  { %170 = vmatpush3.msra.mxu0 %v47_v1 }
  0x21   :  { %171 = vmatprep.subr.mxu0 %v46_v3  ;;  %p230_p13 = por %p229_p12, %p228_p11 }
  0x22   :  { %172 = vmatpush3.msra.mxu0 %v46_v3 }
  0x23   :  { %173 = vmatprep.subr.mxu0 %v45_v4  ;;  %p231_p0 = pnand %p230_p13, %p224_p10 }
  0x24   :  { %174 = vmatpush3.msra.mxu0 %v45_v4 }
  0x25   :  { %176 = vmatmul.mubr.msk.f32.vlgmr.msra.gmra.mxu0 %vm56_vm0, %v44_v5 }
  0xe5   :  { %v177_v7 = vpop.f32.mrf.mxu0 }
  0xe6   :  { %v135_v8 = vadd.f32 %v177_v7, %v158_v6 }
  0xe7   :  { %v129_v9 = vpop.f32.mrf.mxu0 }
  0xe8   :  { %139 = vst [vmem:[#allocation7 + $0x8] sm:$0xff] %v135_v8  ;;  %v130_v10 = vadd.f32 %v158_v6, %v129_v9 }
  0xea   :  { %138 = vst [vmem:[#allocation7] sm:$0xff] %v130_v10 }
  0xeb   :  { %234 = shalt.err (!%p231_p0)
}
  0xec   :  { %151 = dma.vmem_to_hbm [thread:$0]  %s146_s25, 256, %s300_s3, [#allocation4], %s250_s15, %s250_s15, %s251_s16  }
  0xed   :  { %247 = dma.done.wait [#allocation4], 256  }
  0xee   :  { %248 = vsyncadd [#allocation4], 4294967040 }
  0xef   :  { %155 = vsyncpa [#allocation3], 1 }
  0xf0   :  { %156 = vsyncpa [#allocation6], 1 }
  0xf1   :  { %157 = vsyncpa [#allocation4], 1 }

</bundles_post_ra>
